<compile_context>
chip_gen: v5e
topology: v5e:2x2
jax: 0.10.0
libtpu: 0.0.40
codegen_flags: <defaults>
</compile_context>

<pallas_src>
import jax
import jax.numpy as jnp
from jax.experimental import pallas as pl
from jax.experimental.pallas import tpu as pltpu


def _qurnn_seq_kernel(
    x_ref,      # (1, B, I)   current timestep block (streamed)
    h0_ref,     # (B, H)      initial hidden state        (resident)
    ec0_ref,    # (B, H)      initial excited_cell        (resident)
    tc0_ref,    # (B, H)      initial time_cell           (resident)
    w_ref,      # (I+H, 4H)   fused weights [time | absorb | energy_x(+0 h rows) | hweight]
    b_ref,      # (1, 4H)     fused biases, same order
    weh_ref,    # (H, H)      energy_h h-part (consumes h * energy)
    h_out_ref,  # (1, B, H)   per-step h_next
    ec_out_ref, # (1, B, H)   per-step excited_cell
    tc_out_ref, # (1, B, H)   per-step time_cell
    nl_out_ref, # (1, B, H)   per-step (1 - leap)
    h_scr, ec_scr, tc_scr,    # VMEM scratch (B, H): carried state across steps
):
    t = pl.program_id(0)

    @pl.when(t == 0)
    def _():
        h_scr[...] = h0_ref[...]
        ec_scr[...] = ec0_ref[...]
        tc_scr[...] = tc0_ref[...]

    x = x_ref[0]
    h = h_scr[...]
    ec = ec_scr[...]
    tc = tc_scr[...]
    H = h.shape[1]

    # Hoisted off the dot->tanh->cmp->dot->tanh critical chain.
    hc = h * ec

    # Single non-dependent MXU pass: cat([x, h]) (B, I+H) @ W (I+H, 4H) + bias.
    xh = jnp.concatenate([x, h], axis=1)
    pre = jnp.dot(xh, w_ref[...], preferred_element_type=jnp.float32) + b_ref[...]

    # One tanh / one sigmoid over the full 128-lane pre vreg; select gate blocks.
    pre_t = jnp.tanh(pre)
    pre_s = jax.nn.sigmoid(pre)
    up_time = pre_t[:, 0 * H:1 * H]           # tanh(W_time(cat([x, h])))
    absorb = pre_s[:, 1 * H:2 * H]            # sigmoid(W_absorb(cat([x, h])))
    pre_energy_x = pre[:, 2 * H:3 * H]        # x-part of energy_h (raw)
    h_w = pre_s[:, 3 * H:4 * H]               # sigmoid(h_weight(cat([x, h])))

    # time_cell = relu(time_cell + up_time) - 1 ; leap gating
    tc = jnp.maximum(tc + up_time, 0.0) - 1.0
    leap = (tc <= 0.0).astype(jnp.float32)
    notleap = 1.0 - leap
    tc = notleap * tc

    # energy release (exact since leap is {0,1}): ec - leap*ec == notleap*ec
    ec = notleap * ec
    ec = jnp.maximum(ec + absorb, 0.0)

    # h_state = tanh(energy_h(cat([x, h_cur * energy])))  (data-dependent branch)
    h_up = leap * hc                           # == h * (leap * ec_old)
    h_state = jnp.tanh(
        pre_energy_x
        + jnp.dot(h_up, weh_ref[...], preferred_element_type=jnp.float32)
    )

    h_next = jnp.tanh((1.0 - h_w) * h + h_w * h_state)

    # Carry state; write this step's outputs.
    h_scr[...] = h_next
    ec_scr[...] = ec
    tc_scr[...] = tc
    h_out_ref[0] = h_next
    ec_out_ref[0] = ec
    tc_out_ref[0] = tc
    nl_out_ref[0] = notleap


def prepare_qurnn_params(params, input_dim):
    """One-time weight fusion (hoisted out of the step loop).

    params["*_w"] are the pre-transposed (I+H, out) matrices with the x rows
    first (torch Linear weights must be transposed and kept in [x | h] order).
    """
    I = input_dim

    def split(w_t):  # (I+H, out) -> x-part (I, out), h-part (H, out)
        return w_t[:I, :], w_t[I:, :]

    wt_x, wt_h = split(params["W_time_w"])
    wa_x, wa_h = split(params["W_absorb_w"])
    we_x, we_h = split(params["energy_h_w"])
    wh_x, wh_h = split(params["h_weight_w"])

    # Fused along the contraction dim: rows = [x rows | h rows], cols = 4H gates.
    w_x = jnp.concatenate([wt_x, wa_x, we_x, wh_x], axis=1)                  # (I, 4H)
    w_h = jnp.concatenate([wt_h, wa_h, jnp.zeros_like(we_h), wh_h], axis=1)  # (H, 4H)
    w_fused = jnp.concatenate([w_x, w_h], axis=0)                            # (I+H, 4H)
    b_fused = jnp.concatenate(
        [params["W_time_b"], params["W_absorb_b"],
         params["energy_h_b"], params["h_weight_b"]], axis=1)                # (1, 4H)

    return {"w": w_fused, "b": b_fused, "weh": we_h}


def qurnn_sequence_forward(xs, h0, ec0, tc0, fused):
    """Run the QURNNCell over a whole sequence with ONE pallas_call.

    xs: (T, B, I); h0/ec0/tc0: (B, H).  Returns per-step
    (h_seq, ec_seq, tc_seq, notleap_seq), each (T, B, H).
    """
    T, B, I = xs.shape
    H = h0.shape[1]
    assert ec0.shape[1] == H, "cell_dim must equal hidden_dim (needed by h_cur*energy)"

    out_shape = tuple(jax.ShapeDtypeStruct((T, B, H), jnp.float32) for _ in range(4))

    grid_spec = pltpu.PrefetchScalarGridSpec(
        num_scalar_prefetch=0,
        grid=(T,),
        in_specs=[
            pl.BlockSpec((1, B, I), lambda t: (t, 0, 0)),        # x: streamed per step
            pl.BlockSpec((B, H), lambda t: (0, 0)),              # h0   (resident)
            pl.BlockSpec((B, H), lambda t: (0, 0)),              # ec0  (resident)
            pl.BlockSpec((B, H), lambda t: (0, 0)),              # tc0  (resident)
            pl.BlockSpec((I + H, 4 * H), lambda t: (0, 0)),      # fused W (resident)
            pl.BlockSpec((1, 4 * H), lambda t: (0, 0)),          # fused b (resident)
            pl.BlockSpec((H, H), lambda t: (0, 0)),              # weh     (resident)
        ],
        out_specs=[
            pl.BlockSpec((1, B, H), lambda t: (t, 0, 0)),
            pl.BlockSpec((1, B, H), lambda t: (t, 0, 0)),
            pl.BlockSpec((1, B, H), lambda t: (t, 0, 0)),
            pl.BlockSpec((1, B, H), lambda t: (t, 0, 0)),
        ],
        scratch_shapes=[
            pltpu.VMEM((B, H), jnp.float32),   # carried h
            pltpu.VMEM((B, H), jnp.float32),   # carried ec
            pltpu.VMEM((B, H), jnp.float32),   # carried tc
        ],
    )

    return pl.pallas_call(
        _qurnn_seq_kernel,
        out_shape=out_shape,
        grid_spec=grid_spec,
        compiler_params=pltpu.CompilerParams(
            dimension_semantics=("arbitrary",)),   # state carried across T
    )(xs, h0, ec0, tc0, fused["w"], fused["b"], fused["weh"])


def qurnn_cell_forward(x, h_cur, excited_cell, time_cell, fused):
    """Single QURNNCell step (T=1 instance of the sequence kernel)."""
    h_seq, ec_seq, tc_seq, nl_seq = qurnn_sequence_forward(
        x[None], h_cur, excited_cell, time_cell, fused)
    return h_seq[0], ec_seq[0], tc_seq[0], nl_seq[0]


def _reference_step(x, h_cur, ec, tc, params):
    """Pure-JAX reference mirroring the PyTorch forward (single step)."""
    combined = jnp.concatenate([x, h_cur], axis=1)
    up_time = jnp.tanh(combined @ params["W_time_w"] + params["W_time_b"])
    tc = jax.nn.relu(tc + up_time) - 1.0
    leap = (tc <= 0).astype(jnp.float32)
    tc = (1 - leap) * tc
    energy = leap * ec
    ec = ec - energy
    absorb = jax.nn.sigmoid(combined @ params["W_absorb_w"] + params["W_absorb_b"])
    ec = jax.nn.relu(ec + absorb)
    h_up = h_cur * energy
    h_state = jnp.tanh(
        jnp.concatenate([x, h_up], axis=1) @ params["energy_h_w"] + params["energy_h_b"]
    )
    h_w = jax.nn.sigmoid(combined @ params["h_weight_w"] + params["h_weight_b"])
    h_next = jnp.tanh((1 - h_w) * h_cur + h_w * h_state)
    return h_next, ec, tc, 1 - leap


def _reference_sequence(xs, h, ec, tc, params):
    hs, ecs, tcs, nls = [], [], [], []
    for t in range(xs.shape[0]):
        h, ec, tc, nl = _reference_step(xs[t], h, ec, tc, params)
        hs.append(h); ecs.append(ec); tcs.append(tc); nls.append(nl)
    return (jnp.stack(hs), jnp.stack(ecs), jnp.stack(tcs), jnp.stack(nls))


if __name__ == "__main__":
    # cell_dim == hidden_dim is required by the elementwise `h_cur * energy`.
    # 4H = 128 -> the fused gate matmul output is exactly one lane-dense vreg.
    T, B, I, H, C = 8, 8, 16, 32, 32

    key = jax.random.PRNGKey(0)
    ks = jax.random.split(key, 16)

    def init_linear(kw, kb, fan_in, fan_out):
        bound = 1.0 / jnp.sqrt(fan_in)
        w = jax.random.uniform(kw, (fan_in, fan_out), jnp.float32, -bound, bound)
        b = jax.random.uniform(kb, (1, fan_out), jnp.float32, -bound, bound)
        return w, b

    params = {}
    params["W_time_w"], params["W_time_b"] = init_linear(ks[0], ks[1], I + H, C)
    params["W_absorb_w"], params["W_absorb_b"] = init_linear(ks[2], ks[3], I + H, C)
    params["energy_h_w"], params["energy_h_b"] = init_linear(ks[4], ks[5], I + H, H)
    params["h_weight_w"], params["h_weight_b"] = init_linear(ks[6], ks[7], I + H, H)

    xs = jax.random.normal(ks[8], (T, B, I), jnp.float32)
    h0 = jax.random.uniform(ks[9], (B, H), jnp.float32)
    ec0 = jax.random.uniform(ks[10], (B, C), jnp.float32)
    tc0 = jax.random.uniform(ks[11], (B, C), jnp.float32)

    # One-time parameter fusion (hoisted out of the sequence loop).
    fused = prepare_qurnn_params(params, I)
    fused = jax.tree_util.tree_map(jax.block_until_ready, fused)

    run_seq = jax.jit(qurnn_sequence_forward)
    outs = run_seq(xs, h0, ec0, tc0, fused)
    outs = jax.block_until_ready(outs)

    # Single-step path (T=1) also exercised once.
    step = jax.jit(qurnn_cell_forward)
    step_outs = jax.block_until_ready(step(xs[0], h0, ec0, tc0, fused))

    # Correctness vs pure-JAX reference of the PyTorch forward.
    # Tolerance deliberately relaxed to 1e-4: both paths use default-precision
    # (reduced-precision MXU pass) f32 matmuls and errors accumulate over T steps.
    refs = _reference_sequence(xs, h0, ec0, tc0, params)
    for o, r in zip(outs, refs):
        assert o.shape == r.shape
        assert jnp.max(jnp.abs(o - r)) < 1e-4
    step_refs = _reference_step(xs[0], h0, ec0, tc0, params)
    for o, r in zip(step_outs, step_refs):
        assert o.shape == r.shape
        assert jnp.max(jnp.abs(o - r)) < 1e-4

    print("KERNEL_OK")
</pallas_src>

<mosaic_0001>
module attributes {stable_mosaic.version = 11 : i64} {
  func.func @_qurnn_seq_kernel(%arg0: i32, %arg1: memref<1x8x16xf32, #tpu.memory_space<vmem>>, %arg2: memref<8x32xf32, #tpu.memory_space<vmem>>, %arg3: memref<8x32xf32, #tpu.memory_space<vmem>>, %arg4: memref<8x32xf32, #tpu.memory_space<vmem>>, %arg5: memref<48x128xf32, #tpu.memory_space<vmem>>, %arg6: memref<1x128xf32, #tpu.memory_space<vmem>>, %arg7: memref<32x32xf32, #tpu.memory_space<vmem>>, %arg8: memref<1x8x32xf32, #tpu.memory_space<vmem>>, %arg9: memref<1x8x32xf32, #tpu.memory_space<vmem>>, %arg10: memref<1x8x32xf32, #tpu.memory_space<vmem>>, %arg11: memref<1x8x32xf32, #tpu.memory_space<vmem>>, %arg12: memref<8x32xf32, #tpu.memory_space<vmem>>, %arg13: memref<8x32xf32, #tpu.memory_space<vmem>>, %arg14: memref<8x32xf32, #tpu.memory_space<vmem>>) attributes {dimension_semantics = [#tpu.dimension_semantics<arbitrary>], iteration_bounds = array<i64: 8>, scalar_prefetch = 0 : i64, scratch_operands = 3 : i64, tpu.core_type = #tpu.core_type<tc>, window_params = [{transform_indices = @transform_0, window_bounds = array<i64: 1, 8, 16>}, {pipeline_mode = #tpu.pipeline_mode<synchronous>, transform_indices = @transform_1, window_bounds = array<i64: 8, 32>}, {pipeline_mode = #tpu.pipeline_mode<synchronous>, transform_indices = @transform_2, window_bounds = array<i64: 8, 32>}, {pipeline_mode = #tpu.pipeline_mode<synchronous>, transform_indices = @transform_3, window_bounds = array<i64: 8, 32>}, {pipeline_mode = #tpu.pipeline_mode<synchronous>, transform_indices = @transform_4, window_bounds = array<i64: 48, 128>}, {pipeline_mode = #tpu.pipeline_mode<synchronous>, transform_indices = @transform_5, window_bounds = array<i64: 1, 128>}, {pipeline_mode = #tpu.pipeline_mode<synchronous>, transform_indices = @transform_6, window_bounds = array<i64: 32, 32>}, {transform_indices = @transform_7, window_bounds = array<i64: 1, 8, 32>}, {transform_indices = @transform_8, window_bounds = array<i64: 1, 8, 32>}, {transform_indices = @transform_9, window_bounds = array<i64: 1, 8, 32>}, {transform_indices = @transform_10, window_bounds = array<i64: 1, 8, 32>}]} {
    %c0_i32 = arith.constant 0 : i32
    %0 = arith.cmpi eq, %arg0, %c0_i32 : i32
    %1 = arith.extui %0 : i1 to i32
    %c0_i32_0 = arith.constant 0 : i32
    %2 = arith.cmpi ne, %1, %c0_i32_0 : i32
    scf.if %2 {
      %c0_41 = arith.constant 0 : index
      %c0_42 = arith.constant 0 : index
      %67 = vector.load %arg2[%c0_41, %c0_42] : memref<8x32xf32, #tpu.memory_space<vmem>>, vector<8x32xf32>
      %c0_43 = arith.constant 0 : index
      %c0_44 = arith.constant 0 : index
      %68 = vector.load %arg12[%c0_43, %c0_44] : memref<8x32xf32, #tpu.memory_space<vmem>>, vector<8x32xf32>
      tpu.vector_store %arg12[%c0_43, %c0_44], %67 {strides = array<i32>} : memref<8x32xf32, #tpu.memory_space<vmem>>, vector<8x32xf32>,
      %c0_45 = arith.constant 0 : index
      %c0_46 = arith.constant 0 : index
      %69 = vector.load %arg3[%c0_45, %c0_46] : memref<8x32xf32, #tpu.memory_space<vmem>>, vector<8x32xf32>
      %c0_47 = arith.constant 0 : index
      %c0_48 = arith.constant 0 : index
      %70 = vector.load %arg13[%c0_47, %c0_48] : memref<8x32xf32, #tpu.memory_space<vmem>>, vector<8x32xf32>
      tpu.vector_store %arg13[%c0_47, %c0_48], %69 {strides = array<i32>} : memref<8x32xf32, #tpu.memory_space<vmem>>, vector<8x32xf32>,
      %c0_49 = arith.constant 0 : index
      %c0_50 = arith.constant 0 : index
      %71 = vector.load %arg4[%c0_49, %c0_50] : memref<8x32xf32, #tpu.memory_space<vmem>>, vector<8x32xf32>
      %c0_51 = arith.constant 0 : index
      %c0_52 = arith.constant 0 : index
      %72 = vector.load %arg14[%c0_51, %c0_52] : memref<8x32xf32, #tpu.memory_space<vmem>>, vector<8x32xf32>
      tpu.vector_store %arg14[%c0_51, %c0_52], %71 {strides = array<i32>} : memref<8x32xf32, #tpu.memory_space<vmem>>, vector<8x32xf32>,
    } else {
    }
    %c0 = arith.constant 0 : index
    %c0_1 = arith.constant 0 : index
    %c0_2 = arith.constant 0 : index
    %3 = vector.load %arg1[%c0, %c0_1, %c0_2] : memref<1x8x16xf32, #tpu.memory_space<vmem>>, vector<1x8x16xf32>
    %4 = vector.shape_cast %3 : vector<1x8x16xf32> to vector<8x16xf32>
    %c0_3 = arith.constant 0 : index
    %c0_4 = arith.constant 0 : index
    %5 = vector.load %arg12[%c0_3, %c0_4] : memref<8x32xf32, #tpu.memory_space<vmem>>, vector<8x32xf32>
    %c0_5 = arith.constant 0 : index
    %c0_6 = arith.constant 0 : index
    %6 = vector.load %arg13[%c0_5, %c0_6] : memref<8x32xf32, #tpu.memory_space<vmem>>, vector<8x32xf32>
    %c0_7 = arith.constant 0 : index
    %c0_8 = arith.constant 0 : index
    %7 = vector.load %arg14[%c0_7, %c0_8] : memref<8x32xf32, #tpu.memory_space<vmem>>, vector<8x32xf32>
    %8 = arith.mulf %5, %6 : vector<8x32xf32>
    %9 = tpu.concatenate %4, %5 in 1 : vector<8x16xf32>, vector<8x32xf32> -> vector<8x48xf32>
    %c0_9 = arith.constant 0 : index
    %c0_10 = arith.constant 0 : index
    %10 = vector.load %arg5[%c0_9, %c0_10] : memref<48x128xf32, #tpu.memory_space<vmem>>, vector<48x128xf32>
    %cst = arith.constant dense<0.000000e+00> : vector<8x128xf32>
    %11 = tpu.matmul %9, %10, %cst {dimension_numbers = #tpu.dot_dimension_numbers<[1], [0], [0], [1], [0, 0, 1, 1], [], []>} : vector<8x48xf32>, vector<48x128xf32>, vector<8x128xf32> -> vector<8x128xf32>
    %c0_11 = arith.constant 0 : index
    %c0_12 = arith.constant 0 : index
    %12 = vector.load %arg6[%c0_11, %c0_12] : memref<1x128xf32, #tpu.memory_space<vmem>>, vector<1x128xf32>
    %13 = vector.broadcast %12 : vector<1x128xf32> to vector<8x128xf32>
    %14 = arith.addf %11, %13 : vector<8x128xf32>
    %15 = math.tanh %14 : vector<8x128xf32>
    %16 = arith.negf %14 : vector<8x128xf32>
    %17 = math.exp %16 : vector<8x128xf32>
    %cst_13 = arith.constant 1.000000e+00 : f32
    %18 = vector.broadcast %cst_13 : f32 to vector<8x128xf32>
    %19 = arith.addf %18, %17 : vector<8x128xf32>
    %20 = arith.divf %18, %19 : vector<8x128xf32>
    %21 = vector.extract_strided_slice %15 {offsets = [0, 0], sizes = [8, 32], strides = [1, 1]} : vector<8x128xf32> to vector<8x32xf32>
    %22 = vector.extract_strided_slice %20 {offsets = [0, 32], sizes = [8, 32], strides = [1, 1]} : vector<8x128xf32> to vector<8x32xf32>
    %23 = vector.extract_strided_slice %14 {offsets = [0, 64], sizes = [8, 32], strides = [1, 1]} : vector<8x128xf32> to vector<8x32xf32>
    %24 = vector.extract_strided_slice %20 {offsets = [0, 96], sizes = [8, 32], strides = [1, 1]} : vector<8x128xf32> to vector<8x32xf32>
    %25 = arith.addf %7, %21 : vector<8x32xf32>
    %cst_14 = arith.constant 0.000000e+00 : f32
    %26 = vector.broadcast %cst_14 : f32 to vector<8x32xf32>
    %27 = arith.maximumf %25, %26 : vector<8x32xf32>
    %cst_15 = arith.constant 1.000000e+00 : f32
    %28 = vector.broadcast %cst_15 : f32 to vector<8x32xf32>
    %29 = arith.subf %27, %28 : vector<8x32xf32>
    %cst_16 = arith.constant 0.000000e+00 : f32
    %30 = vector.broadcast %cst_16 : f32 to vector<8x32xf32>
    %31 = arith.cmpf ole, %29, %30 : vector<8x32xf32>
    %32 = arith.extui %31 : vector<8x32xi1> to vector<8x32xi32>
    %33 = arith.sitofp %32 : vector<8x32xi32> to vector<8x32xf32>
    %cst_17 = arith.constant 1.000000e+00 : f32
    %34 = vector.broadcast %cst_17 : f32 to vector<8x32xf32>
    %35 = arith.subf %34, %33 : vector<8x32xf32>
    %36 = arith.mulf %35, %29 : vector<8x32xf32>
    %37 = arith.mulf %35, %6 : vector<8x32xf32>
    %38 = arith.addf %37, %22 : vector<8x32xf32>
    %cst_18 = arith.constant 0.000000e+00 : f32
    %39 = vector.broadcast %cst_18 : f32 to vector<8x32xf32>
    %40 = arith.maximumf %38, %39 : vector<8x32xf32>
    %41 = arith.mulf %33, %8 : vector<8x32xf32>
    %c0_19 = arith.constant 0 : index
    %c0_20 = arith.constant 0 : index
    %42 = vector.load %arg7[%c0_19, %c0_20] : memref<32x32xf32, #tpu.memory_space<vmem>>, vector<32x32xf32>
    %cst_21 = arith.constant dense<0.000000e+00> : vector<8x32xf32>
    %43 = tpu.matmul %41, %42, %cst_21 {dimension_numbers = #tpu.dot_dimension_numbers<[1], [0], [0], [1], [0, 0, 1, 1], [], []>} : vector<8x32xf32>, vector<32x32xf32>, vector<8x32xf32> -> vector<8x32xf32>
    %44 = arith.addf %23, %43 : vector<8x32xf32>
    %45 = math.tanh %44 : vector<8x32xf32>
    %cst_22 = arith.constant 1.000000e+00 : f32
    %46 = vector.broadcast %cst_22 : f32 to vector<8x32xf32>
    %47 = arith.subf %46, %24 : vector<8x32xf32>
    %48 = arith.mulf %47, %5 : vector<8x32xf32>
    %49 = arith.mulf %24, %45 : vector<8x32xf32>
    %50 = arith.addf %48, %49 : vector<8x32xf32>
    %51 = math.tanh %50 : vector<8x32xf32>
    %c0_23 = arith.constant 0 : index
    %c0_24 = arith.constant 0 : index
    %52 = vector.load %arg12[%c0_23, %c0_24] : memref<8x32xf32, #tpu.memory_space<vmem>>, vector<8x32xf32>
    tpu.vector_store %arg12[%c0_23, %c0_24], %51 {strides = array<i32>} : memref<8x32xf32, #tpu.memory_space<vmem>>, vector<8x32xf32>,
    %c0_25 = arith.constant 0 : index
    %c0_26 = arith.constant 0 : index
    %53 = vector.load %arg13[%c0_25, %c0_26] : memref<8x32xf32, #tpu.memory_space<vmem>>, vector<8x32xf32>
    tpu.vector_store %arg13[%c0_25, %c0_26], %40 {strides = array<i32>} : memref<8x32xf32, #tpu.memory_space<vmem>>, vector<8x32xf32>,
    %c0_27 = arith.constant 0 : index
    %c0_28 = arith.constant 0 : index
    %54 = vector.load %arg14[%c0_27, %c0_28] : memref<8x32xf32, #tpu.memory_space<vmem>>, vector<8x32xf32>
    tpu.vector_store %arg14[%c0_27, %c0_28], %36 {strides = array<i32>} : memref<8x32xf32, #tpu.memory_space<vmem>>, vector<8x32xf32>,
    %c0_29 = arith.constant 0 : index
    %c0_30 = arith.constant 0 : index
    %c0_31 = arith.constant 0 : index
    %55 = vector.load %arg8[%c0_29, %c0_30, %c0_31] : memref<1x8x32xf32, #tpu.memory_space<vmem>>, vector<1x8x32xf32>
    %56 = vector.shape_cast %55 : vector<1x8x32xf32> to vector<8x32xf32>
    %57 = vector.shape_cast %51 : vector<8x32xf32> to vector<1x8x32xf32>
    tpu.vector_store %arg8[%c0_29, %c0_30, %c0_31], %57 {strides = array<i32>} : memref<1x8x32xf32, #tpu.memory_space<vmem>>, vector<1x8x32xf32>,
    %c0_32 = arith.constant 0 : index
    %c0_33 = arith.constant 0 : index
    %c0_34 = arith.constant 0 : index
    %58 = vector.load %arg9[%c0_32, %c0_33, %c0_34] : memref<1x8x32xf32, #tpu.memory_space<vmem>>, vector<1x8x32xf32>
    %59 = vector.shape_cast %58 : vector<1x8x32xf32> to vector<8x32xf32>
    %60 = vector.shape_cast %40 : vector<8x32xf32> to vector<1x8x32xf32>
    tpu.vector_store %arg9[%c0_32, %c0_33, %c0_34], %60 {strides = array<i32>} : memref<1x8x32xf32, #tpu.memory_space<vmem>>, vector<1x8x32xf32>,
    %c0_35 = arith.constant 0 : index
    %c0_36 = arith.constant 0 : index
    %c0_37 = arith.constant 0 : index
    %61 = vector.load %arg10[%c0_35, %c0_36, %c0_37] : memref<1x8x32xf32, #tpu.memory_space<vmem>>, vector<1x8x32xf32>
    %62 = vector.shape_cast %61 : vector<1x8x32xf32> to vector<8x32xf32>
    %63 = vector.shape_cast %36 : vector<8x32xf32> to vector<1x8x32xf32>
    tpu.vector_store %arg10[%c0_35, %c0_36, %c0_37], %63 {strides = array<i32>} : memref<1x8x32xf32, #tpu.memory_space<vmem>>, vector<1x8x32xf32>,
    %c0_38 = arith.constant 0 : index
    %c0_39 = arith.constant 0 : index
    %c0_40 = arith.constant 0 : index
    %64 = vector.load %arg11[%c0_38, %c0_39, %c0_40] : memref<1x8x32xf32, #tpu.memory_space<vmem>>, vector<1x8x32xf32>
    %65 = vector.shape_cast %64 : vector<1x8x32xf32> to vector<8x32xf32>
    %66 = vector.shape_cast %35 : vector<8x32xf32> to vector<1x8x32xf32>
    tpu.vector_store %arg11[%c0_38, %c0_39, %c0_40], %66 {strides = array<i32>} : memref<1x8x32xf32, #tpu.memory_space<vmem>>, vector<1x8x32xf32>,
    return
  }
  func.func @transform_0(%arg0: i32) -> (i32, i32, i32) {
    %c0_i32 = arith.constant 0 : i32
    %c0_i32_0 = arith.constant 0 : i32
    %c0_i32_1 = arith.constant 0 : i32
    return %arg0, %c0_i32, %c0_i32_0 : i32, i32, i32
  }
  func.func @transform_1(%arg0: i32) -> (i32, i32) {
    %c0_i32 = arith.constant 0 : i32
    %c0_i32_0 = arith.constant 0 : i32
    %c0_i32_1 = arith.constant 0 : i32
    return %c0_i32, %c0_i32_0 : i32, i32
  }
  func.func @transform_2(%arg0: i32) -> (i32, i32) {
    %c0_i32 = arith.constant 0 : i32
    %c0_i32_0 = arith.constant 0 : i32
    %c0_i32_1 = arith.constant 0 : i32
    return %c0_i32, %c0_i32_0 : i32, i32
  }
  func.func @transform_3(%arg0: i32) -> (i32, i32) {
    %c0_i32 = arith.constant 0 : i32
    %c0_i32_0 = arith.constant 0 : i32
    %c0_i32_1 = arith.constant 0 : i32
    return %c0_i32, %c0_i32_0 : i32, i32
  }
  func.func @transform_4(%arg0: i32) -> (i32, i32) {
    %c0_i32 = arith.constant 0 : i32
    %c0_i32_0 = arith.constant 0 : i32
    %c0_i32_1 = arith.constant 0 : i32
    return %c0_i32, %c0_i32_0 : i32, i32
  }
  func.func @transform_5(%arg0: i32) -> (i32, i32) {
    %c0_i32 = arith.constant 0 : i32
    %c0_i32_0 = arith.constant 0 : i32
    %c0_i32_1 = arith.constant 0 : i32
    return %c0_i32, %c0_i32_0 : i32, i32
  }
  func.func @transform_6(%arg0: i32) -> (i32, i32) {
    %c0_i32 = arith.constant 0 : i32
    %c0_i32_0 = arith.constant 0 : i32
    %c0_i32_1 = arith.constant 0 : i32
    return %c0_i32, %c0_i32_0 : i32, i32
  }
  func.func @transform_7(%arg0: i32) -> (i32, i32, i32) {
    %c0_i32 = arith.constant 0 : i32
    %c0_i32_0 = arith.constant 0 : i32
    %c0_i32_1 = arith.constant 0 : i32
    return %arg0, %c0_i32, %c0_i32_0 : i32, i32, i32
  }
  func.func @transform_8(%arg0: i32) -> (i32, i32, i32) {
    %c0_i32 = arith.constant 0 : i32
    %c0_i32_0 = arith.constant 0 : i32
    %c0_i32_1 = arith.constant 0 : i32
    return %arg0, %c0_i32, %c0_i32_0 : i32, i32, i32
  }
  func.func @transform_9(%arg0: i32) -> (i32, i32, i32) {
    %c0_i32 = arith.constant 0 : i32
    %c0_i32_0 = arith.constant 0 : i32
    %c0_i32_1 = arith.constant 0 : i32
    return %arg0, %c0_i32, %c0_i32_0 : i32, i32, i32
  }
  func.func @transform_10(%arg0: i32) -> (i32, i32, i32) {
    %c0_i32 = arith.constant 0 : i32
    %c0_i32_0 = arith.constant 0 : i32
    %c0_i32_1 = arith.constant 0 : i32
    return %arg0, %c0_i32, %c0_i32_0 : i32, i32, i32
  }
}

</mosaic_0001>

<bundles_post_ra>
// kernel: qurnn_sequence_forward.1
= control target key start
LH: loop header
LB: loop body
LE: loop exit
PB: predicated region body
PF: predicated region fallthrough
CT: control target
= control target key end

     0   :  { %s1775_s0 = inlined_call_operand.hbm [shape: f32[8,8,16], index: 0, kind: input, shape index: {}]   ;;  %s1776_s1 = inlined_call_operand.hbm [shape: f32[8,32], index: 1, kind: input, shape index: {}]   ;;  %s1777_s2 = inlined_call_operand.hbm [shape: f32[8,32], index: 2, kind: input, shape index: {}]   ;;  %s1778_s3 = inlined_call_operand.hbm [shape: f32[8,32], index: 3, kind: input, shape index: {}]   ;;  %s1779_s4 = inlined_call_operand.hbm [shape: f32[48,128], index: 4, kind: input, shape index: {}]   ;;  %s1780_s5 = inlined_call_operand.vmem [shape: f32[1,128], index: 5, kind: input, shape index: {}]   ;;  %s1781_s6 = inlined_call_operand.hbm [shape: f32[32,32], index: 6, kind: input, shape index: {}]   ;;  %s1782_s7 = inlined_call_operand.hbm [shape: f32[8,8,32], index: 7, kind: output, shape index: {0}]   ;;  %s1783_s8 = inlined_call_operand.hbm [shape: f32[8,8,32], index: 8, kind: output, shape index: {1}]   ;;  %s1784_s9 = inlined_call_operand.hbm [shape: f32[8,8,32], index: 9, kind: output, shape index: {2}]   ;;  %s1785_s10 = inlined_call_operand.hbm [shape: f32[8,8,32], index: 10, kind: output, shape index: {3}]  }
   0x1   :  { %1790 = sst [smem:[#allocation29_spill]] %s1775_s0 }
   0x2   :  { %1791 = sst [smem:[#allocation30_spill]] %s1776_s1 }
   0x3   :  { %1792 = sst [smem:[#allocation31_spill]] %s1777_s2 }
   0x4   :  { %1793 = sst [smem:[#allocation32_spill]] %s1778_s3 }
   0x5   :  { %1794 = sst [smem:[#allocation33_spill]] %s1779_s4 }
   0x6   :  { %16 = vsyncpa [#allocation6], 0 }
   0x7   :  { %18 = vsyncpa [#allocation6 + $0x1], 0 }
   0x8   :  { %19 = vsyncpa [#allocation9], 0 }
   0x9   :  { %20 = vsyncpa [#allocation12], 0 }
   0xa   :  { %21 = vsyncpa [#allocation15], 0 }
   0xb   :  { %22 = vsyncpa [#allocation7], 0 }
   0xc   :  { %24 = vsyncpa [#allocation7 + $0x1], 0 }
   0xd   :  { %25 = vsyncpa [#allocation18], 0 }
   0xe   :  { %27 = vsyncpa [#allocation18 + $0x1], 0 }
   0xf   :  { %28 = vsyncpa [#allocation21], 0 }
  0x10   :  { %30 = vsyncpa [#allocation21 + $0x1], 0  ;;  %s1504_s13 = smov 0   ;;  %s1506_s14 = smov 0  }
  0x11   :  { %s1508_s15 = smov 0   ;;  %s1510_s16 = smov 0  }
  0x12 LB: > { %s1795_s1 = sld [smem:[#allocation30_spill]]  ;;  %s1528_s20 = sadd.s32 4294967295, %s1435_s16   ;;  %s1435_s16 = sphi %s1510_s16, %s1816_s16   ;;  %s1431_s15 = sphi %s1508_s15, %s1815_s15   ;;  %s1427_s14 = sphi %s1506_s14, %s1814_s14   ;;  %s1423_s13 = sphi %s1504_s13, %s1813_s13  }
  0x13   : > { %p919_p0 = scmp.ge.s32.totalorder %s1435_s16, 1  ;;  %p57_p1 = scmp.eq.s32.totalorder %s1528_s20, 0 }
  0x14   : > { %p297_p2 = scmp.lt.s32.totalorder %s1435_s16, 9  ;;  %s1437_s22 = smov [#allocation8]  }
  0x15   : > { %s311_s23 = sshll.u32 %s1437_s22, 4  ;;  %s1797_s3 = sld [smem:[#allocation32_spill]]  ;;  %s312_s23 = int_to_ptr.vmem [resolvable:$true] %s311_s23 }
  0x16   : > { %p1534_p4 = pnand %p919_p0, %p297_p2  ;;  %s1438_s28 = smov [#allocation11]  }
  0x17   : > { %s335_s29 = sshll.u32 %s1438_s28, 4  ;;  %s1799_s2 = sld [smem:[#allocation31_spill]]  ;;  %s336_s29 = int_to_ptr.vmem [resolvable:$true] %s335_s29 }
  0x18   : > { %s309_s19 = sshll.u32 %s1795_s1, 4  ;;  %p985_p5 = pneg %p1534_p4  ;;  %s310_s19 = int_to_ptr.hbm [resolvable:$true] %s309_s19 }
  0x19   : > { %s1800_s4 = sld [smem:[#allocation33_spill]]  ;;  %s1439_s24 = smov [#allocation10]  }
  0x1a   : > { %p1545_p6 = pnand %p985_p5, %p57_p1  ;;  %s323_s25 = sshll.u32 %s1439_s24, 4  ;;  %s324_s25 = int_to_ptr.vmem [resolvable:$true] %s323_s25 }
  0x1b   : > { %s333_s26 = sshll.u32 %s1797_s3, 4  ;;  %s1440_s28 = smov [#allocation13]   ;;  %s334_s26 = int_to_ptr.hbm [resolvable:$true] %s333_s26 }
  0x1c   : > { %988 = dma.hbm_to_vmem [thread:$0]  (!%p1545_p6), %s310_s19, 128, %s312_s23, [#allocation9]  }
  0x1d   : > { %s321_s12 = sshll.u32 %s1799_s2, 4  ;;  %s346_s19 = sshll.u32 %s1440_s28, 4  ;;  %s322_s12 = int_to_ptr.hbm [resolvable:$true] %s321_s12  ;;  %s347_s19 = int_to_ptr.vmem [resolvable:$true] %s346_s19 }
  0x1e   : > { %994 = dma.hbm_to_vmem [thread:$0]  (!%p1545_p6), %s334_s26, 128, %s336_s29, [#allocation12]  }
  0x1f   : > { %s344_s22 = sshll.u32 %s1800_s4, 4  ;;  %s1441_s23 = smov 128   ;;  %s345_s22 = int_to_ptr.hbm [resolvable:$true] %s344_s22 }
  0x20   : > { %991 = dma.hbm_to_vmem [thread:$0]  (!%p1545_p6), %s322_s12, 128, %s324_s25, [#allocation9]  }
  0x21   : > { %s1442_s26 = smov 8   ;;  %s361_s11 = sshll.u32 %s1781_s6, 4  ;;  %s362_s11 = int_to_ptr.hbm [resolvable:$true] %s361_s11 }
  0x22   : > { %997 = dma.hbm_to_vmem [thread:$0]  (!%p1545_p6), %s345_s22, 768, %s347_s19, [#allocation12], %s1441_s23, %s1441_s23, %s1442_s26  }
  0x23   : > { %s1443_s12 = smov [#allocation14]   ;;  %s1786_s18 = sadd.s32 4294967294, %s1435_s16  }
  0x24   : > { %s363_s17 = sshll.u32 %s1443_s12, 4  ;;  %s1570_s24 = sadd.s32 1, %s1435_s16   ;;  %s364_s17 = int_to_ptr.vmem [resolvable:$true] %s363_s17 }
  0x25   : > { %1000 = dma.hbm_to_vmem [thread:$0]  (!%p1545_p6), %s362_s11, 512, %s364_s17, [#allocation15], %s1441_s23, %s1441_s23, %s1442_s26  }
  0x26   : > { %s43_s22 = sadd.s32 1, %s1431_s15  ;;  %s40_s25 = ssub.s32 %s1435_s16, %s1570_s24 }
  0x27   : > { %p50_p7 = scmp.ne.s32.totalorder %s1431_s15, %s1427_s14  ;;  %p41_p8 = scmp.eq.s32.totalorder %s40_s25, 0 }
  0x28   : > { %p51_p9 = scmp.eq.s32.totalorder %s1435_s16, 0  ;;  %p56_p10 = scmp.ne.s32.totalorder %s1427_s14, %s1423_s13 }
  0x29   : > { %p206_p11 = scmp.eq.s32.totalorder %s1528_s20, 7  ;;  %p212_p0 = scmp.eq.s32.totalorder %s1786_s18, 7 }
  0x2a   : > { %s1582_s28 = scalar_select %p41_p8, %s1431_s15, %s43_s22  }
  0x2b   : > { %p1586_p12 = por %p57_p1, %p56_p10  ;;  %p1590_p13 = por %p206_p11, %p50_p7 }
  0x2c   : > { %p52_p2 = por %p51_p9, %p50_p7  ;;  %s377_s23 = sand.u32 1, %s1431_s15  }
  0x2d   : > { %p1597_p5 = por %p212_p0, %p56_p10  ;;  %p1023_p6 = scmp.lt.s32.totalorder %s1435_s16, 8 }
  0x2e   : > { %s926_s29 = sshll.u32 %s377_s23, 3  ;;  %s927_s30 = sshll.u32 %s1435_s16, 3 }
  0x2f   : > { %s1804_s0 = sld [smem:[#allocation29_spill]]  ;;  %s381_s25 = scalar_lea.vmem [#allocation5], %s926_s29 }
  0x30   : > { %s389_s1 = sshll.u32 %s381_s25, 4  ;;  %p1606_p8 = pnand %p1023_p6, %p52_p2  ;;  %s390_s1 = int_to_ptr.vmem [resolvable:$true] %s389_s1 }
  0x31   : > { %s378_s2 = scalar_lea.sflag [#allocation6], %s377_s23 }
  0x32   : > { %p1239_p9 = pneg %p1606_p8 }
  0x35   : > { %s385_s17 = scalar_lea.hbm %s1804_s0, %s927_s30  ;;  %s1242_s29 = scalar_lea.hbm %s1804_s0, 64 }
  0x36   : > { %s387_s22 = sshll.u32 %s385_s17, 4  ;;  %s388_s22 = int_to_ptr.hbm [resolvable:$true] %s387_s22 }
  0x37   : > { %s1235_s3 = sshra.s32 %s388_s22, 4  ;;  %s1236_s3 = int_to_ptr.hbm [resolvable:$true] %s1235_s3 }
  0x38   : > { %s1237_s4 = scalar_lea.hbm %s1236_s3, 8  ;;  %p1243_p0 = scmp.lt.s32.totalorder %s1236_s3, %s1804_s0 }
  0x39   : > { %p1238_p7 = scmp.ne.s32.totalorder %s1236_s3, %s1237_s4  ;;  %p1244_p2 = scmp.lt.s32.totalorder %s1242_s29, %s1237_s4 }
  0x3b   : > { %p1240_p10 = pnand %p1239_p9, %p1238_p7  ;;  %p1245_p6 = por %p1244_p2, %p1243_p0 }
  0x3d   : > { %p1241_p11 = pneg %p1240_p10 }
  0x3f   : > { %p1246_p3 = pnand %p1245_p6, %p1241_p11 }
  0x41   : > { %1249 = shalt.err (!%p1246_p3)
}
  0x42   : > { %1004 = dma.hbm_to_vmem [thread:$0]  (!%p1606_p8), %s388_s22, 128, %s390_s1, %s378_s2  }
  0x43   : > { %398 = sbr.rel (%p1534_p4) target bundleno = 828 (0x33c), region = 48  ;;  %s1623_s23 = sand.u32 (!%p1534_p4), 1, %s1427_s14  }
  0x44   : > { %s1626_s25 = sshll.u32 (!%p1534_p4), %s1623_s23, 3  ;;  %s401_s3 = scalar_lea.sflag (!%p1534_p4), [#allocation6], %s1623_s23 }
  0x45   : > { %s404_s4 = scalar_lea.vmem (!%p1534_p4), [#allocation5], %s1626_s25 }
  0x48   : > { %1394 = dma.done.wait (%p1586_p12), %s401_s3, 128  }
  0x49   : > { %1396 = vsyncadd (%p1586_p12), %s401_s3, 4294967168 }
  0x4a   : > { %1398 = dma.done.wait (%p57_p1), [#allocation9], 256  }
  0x4b   : > { %1400 = vsyncadd (%p57_p1), [#allocation9], 4294967040 }
  0x4c   : > { %1402 = dma.done.wait (%p57_p1), [#allocation12], 896  }
  0x4d   : > { %1404 = vsyncadd (%p57_p1), [#allocation12], 4294966400 }
  0x4e   : > { %1406 = dma.done.wait (%p57_p1), [#allocation15], 512  }
  0x4f   : > { %1408 = vsyncadd (%p57_p1), [#allocation15], 4294966784  ;;  %s467_s2 = scalar_lea.vmem [#allocation17], %s1626_s25  ;;  %s1789_s21 = scalar_lea.vmem [#allocation19], %s1626_s25 }
  0x50   : > { %s1787_s18 = scalar_lea.vmem [#allocation20], %s1626_s25  ;;  %p1806_p3 = scmp.ne.s32.totalorder %s1528_s20, 0 }
  0x52   : > { %485 = sbr.rel (%p1806_p3) target bundleno = 91 (0x5b), region = 76 }
  0x57   : > { %v486_v0 = vld [vmem:[#allocation8] sm:$0xff]  ;;  %vm487_vm0 = vcmask 261120   ;;  %v489_v1 = vld [vmem:[#allocation10] sm:$0xff]  ;;  %v491_v2 = vld [vmem:[#allocation11] sm:$0xff] }
  0x58   : > { %488 = vst.msk [vmem:[#allocation2] sm:$0xff] %vm487_vm0, %v486_v0 }
  0x59   : > { %490 = vst.msk [vmem:[#allocation3] sm:$0xff] %vm487_vm0, %v489_v1 }
  0x5a   : > { %492 = vst.msk [vmem:[#allocation4] sm:$0xff] %vm487_vm0, %v491_v2 }
  0x5b PF: > { %v509_v4 = vld [vmem:[#allocation13 + $0x28] sm:$0xff]  ;;  %v508_v5 = vld [vmem:[#allocation13 + $0x20] sm:$0xff]  ;;  %s1444_s27 = smov 16   ;;  %v507_v6 = vld [vmem:[#allocation13 + $0x18] sm:$0xff]  ;;  %s1445_s22 = smov 96   ;;  %vm502_vm1 = vcmask 130048  }
  0x5c   : > { %528 = vmatpush.msra.mxu0 %v509_v4  ;;  %v506_v7 = vld [vmem:[#allocation13 + $0x10] sm:$0xff]  ;;  %v505_v8 = vld [vmem:[#allocation13 + $0x8] sm:$0xff]  ;;  %v504_v9 = vld [vmem:[#allocation13] sm:$0xff]  ;;  %vm514_vm2 = vcmask 392192   ;;  %v1446_v30 = vmov 0.0   ;;  %vm578_vm4 = vcmask 261120  }
  0x5d   : > { %v493_v10 = vld [vmem:[%s404_s4] sm:$0xff]  ;;  %v577_v13 = vld [vmem:[#allocation14 + $0x18] sm:$0xff]  ;;  %v574_v16 = vld [vmem:[#allocation14] sm:$0xff]  ;;  %s1447_s29 = smov 64   ;;  %s1788_s12 = smov 32  }
  0x5e   : > { %529 = vmatpush.msra.mxu0 %v508_v5  ;;  %594 = vmatpush.msra.mxu1 %v577_v13  ;;  %v576_v14 = vld [vmem:[#allocation14 + $0x10] sm:$0xff]  ;;  %v575_v15 = vld [vmem:[#allocation14 + $0x8] sm:$0xff]  ;;  %s1676_s17 = sshll.u32 %s1528_s20, 3  ;;  %s673_s30 = sshll.u32 %s467_s2, 4  ;;  %s674_s30 = int_to_ptr.vmem [resolvable:$true] %s673_s30 }
  0x5f   : > { %v494_v3 = vld [vmem:[#allocation2] sm:$0xff]  ;;  %s1285_s3 = scalar_lea.hbm %s1783_s8, 64 }
  0x60   : > { %499 = vrot.lane.b32.xlu0 %v494_v3, %s1444_s27  ;;  %609 = vrot.lane.b32.xlu1 %v494_v3, %s1445_s22  ;;  %v1074_v17 = vld [vmem:[%s1780_s5] ss:$0 sm:$0xff]  ;;  %v495_v25 = vld [vmem:[#allocation3] sm:$0xff]  ;;  %s671_s27 = scalar_lea.hbm %s1783_s8, %s1676_s17 }
  0x61   : > { %530 = vmatpush.msra.mxu0 %v507_v6  ;;  %595 = vmatpush.msra.mxu1 %v576_v14  ;;  %v496_v21 = vld [vmem:[#allocation4] sm:$0xff]  ;;  %v497_v28 = vmul.f32 %v495_v25, %v494_v3  ;;  %s675_s11 = sshll.u32 %s671_s27, 4  ;;  %s676_s11 = int_to_ptr.hbm [resolvable:$true] %s675_s11 }
  0x62   : > { %s1279_s1 = sshra.s32 %s676_s11, 4  ;;  %s1280_s1 = int_to_ptr.hbm [resolvable:$true] %s1279_s1 }
  0x63   : > { %531 = vmatpush.msra.mxu0 %v506_v7  ;;  %596 = vmatpush.msra.mxu1 %v575_v15  ;;  %p1286_p8 = scmp.lt.s32.totalorder %s1280_s1, %s1783_s8 }
  0x65   : > { %532 = vmatpush.msra.mxu0 %v505_v8  ;;  %597 = vmatpush.msra.mxu1 %v574_v16 }
  0x67   : > { %533 = vmatpush.msra.mxu0 %v504_v9 }
  0xd2   : > { %v500_v11 = vpop.permute.xlu0 %499 }
  0xd3   : > { %v503_v12 = vsel %vm502_vm1, %v493_v10, %v500_v11 }
  0xd4   : > { %940 = vmatmul.msk.f32.vlgmr.msra.gmra.mxu0 %vm514_vm2, %v503_v12 }
 0x151   : > { %v535_v18 = vpop.f32.mrf.mxu0 }
 0x152   : > { %v536_v19 = vadd.f32 %v1074_v17, %v535_v18 }
 0x154   : > { %1075 = vtanh.f32 %v536_v19  ;;  %v941_v20 = vmul.f32 -1.442695, %v536_v19 }
 0x156   : > { %1077 = vpow2.f32 %v941_v20 }
 0x15a   : > { %v1076_v22 = vpop.eup %1075 }
 0x15b   : > { %v558_v23 = vadd.f32 %v1076_v22, %v496_v21 }
 0x15c   : > { %v1078_v24 = vpop.eup %1077 }
 0x15d   : > { %v542_v26 = vadd.f32 1.0, %v1078_v24  ;;  %v559_v27 = vmax.f32 %v558_v23, 0.0 }
 0x15f   : > { %1079 = vrcp.f32 %v542_v26  ;;  %v942_v29 = vadd.f32 -1.0, %v559_v27  ;;  %v554_v38 = vand.u32 2147483648, %v542_v26  ;;  %v552_v40 = vand.u32 2147483647, %v542_v26 }
 0x160   : > { %vm548_vm6 = vweird.f32 %v542_v26 }
 0x161   : > { %vm561_vm3 = vcmp.le.f32.partialorder %v942_v29, 0.0  ;;  %v555_v42 = vor.u32 1.1754944e-38, %v554_v38  ;;  %vm553_vm8 = vcmp.eq.f32.partialorder %v552_v40, 8.507059e+37 }
 0x162   : > { %v943_v31 = vsel %vm561_vm3, 1.0, %v1446_v30 }
 0x163   : > { %v564_v32 = vsub.f32 1.0, %v943_v31  ;;  %v573_v33 = vmul.f32 %v943_v31, %v497_v28 }
 0x165   : > { %v1080_v34 = vpop.eup %1079  ;;  %944 = vmatmul.msk.f32.vlgmr.msra.gmra.mxu1 %vm578_vm4, %v573_v33  ;;  %630 = vst.msk [vmem:[%s1787_s18] sm:$0xff] %vm578_vm4, %v564_v32  ;;  %v565_v35 = vmul.f32 %v942_v29, %v564_v32  ;;  %v566_v45 = vmul.f32 %v564_v32, %v495_v25  ;;  %s1281_s18 = scalar_lea.hbm %s1280_s1, 8 }
 0x166   : > { %v544_v36 = vmul.f32 %v1080_v34, %v542_v26  ;;  %vm549_vm5 = vweird.f32 %v1080_v34  ;;  %p1282_p1 = scmp.ne.s32.totalorder %s1280_s1, %s1281_s18  ;;  %p1287_p7 = scmp.lt.s32.totalorder %s1285_s3, %s1281_s18 }
 0x167   : > { %626 = vst.msk [vmem:[#allocation4] sm:$0xff] %vm578_vm4, %v565_v35  ;;  %vm550_vm7 = vmor %vm548_vm6, %vm549_vm5 }
 0x168   : > { %v545_v37 = vsub.f32 1.0, %v544_v36  ;;  %629 = vst.msk [vmem:[%s1789_s21] sm:$0xff] %vm578_vm4, %v565_v35  ;;  %p1283_p4 = pnand %p1282_p1, %p1590_p13  ;;  %p1288_p9 = por %p1287_p7, %p1286_p8 }
 0x16a   : > { %v546_v39 = vmul.f32 %v1080_v34, %v545_v37  ;;  %p1284_p12 = pneg %p1283_p4 }
 0x16c   : > { %v547_v41 = vadd.f32 %v1080_v34, %v546_v39  ;;  %p1289_p10 = pnand %p1288_p9, %p1284_p12 }
 0x16e   : > { %v551_v43 = vsel %vm550_vm7, %v1080_v34, %v547_v41 }
 0x16f   : > { %v1666_v44 = vsel %vm553_vm8, %v555_v42, %v551_v43 }
 0x170   : > { %568 = vrot.lane.b32.xlu2 %v1666_v44, %s1445_s22  ;;  %s636_s22 = sand.u32 1, %s1528_s20  }
 0x1ca   : > { %v569_v46 = vpop.permute.xlu2 %568 }
 0x1cb   : > { %v571_v47 = vadd.f32 %v569_v46, %v566_v45 }
 0x1cd   : > { %v572_v48 = vmax.f32 %v571_v47, 0.0 }
 0x1cf   : > { %625 = vst.msk [vmem:[#allocation3] sm:$0xff] %vm578_vm4, %v572_v48 }
 0x1d0   : > { %628 = vst.msk [vmem:[%s467_s2] sm:$0xff] %vm578_vm4, %v572_v48 }
 0x1e2   : > { %v599_v49 = vpop.f32.mrf.mxu1 }
 0x1e3   : > { %603 = vrot.lane.b32.xlu0 %v599_v49, %s1447_s29  ;;  %s1685_s29 = scalar_lea.sflag [#allocation18], %s636_s22 }
 0x255   : > { %v604_v50 = vpop.permute.xlu0 %603 }
 0x256   : > { %v606_v51 = vadd.f32 %v604_v50, %v536_v19 }
 0x258   : > { %1081 = vtanh.f32 %v606_v51 }
 0x25e   : > { %v1082_v52 = vpop.eup %1081 }
 0x25f   : > { %614 = vrot.lane.b32.xlu1 %v1082_v52, %s1788_s12 }
 0x260   : > { %1292 = shalt.err (!%p1289_p10)
}
 0x261   : > { %978 = dma.vmem_to_hbm [thread:$0]  (%p1590_p13), %s674_s30, 128, %s676_s11, %s1685_s29  }
 0x262   : > { %s685_s21 = scalar_lea.hbm %s1784_s9, %s1676_s17  ;;  %s1807_s12 = scalar_lea.vmem [#allocation19], %s1626_s25 }
 0x263   : > { %s687_s22 = sshll.u32 %s1807_s12, 4  ;;  %s689_s4 = sshll.u32 %s685_s21, 4  ;;  %s688_s22 = int_to_ptr.vmem [resolvable:$true] %s687_s22  ;;  %s690_s4 = int_to_ptr.hbm [resolvable:$true] %s689_s4 }
 0x264   : > { %s1307_s1 = sshra.s32 %s690_s4, 4  ;;  %s1313_s30 = scalar_lea.hbm %s1784_s9, 64  ;;  %s1308_s1 = int_to_ptr.hbm [resolvable:$true] %s1307_s1 }
 0x265   : > { %s1309_s18 = scalar_lea.hbm %s1308_s1, 8  ;;  %p1314_p6 = scmp.lt.s32.totalorder %s1308_s1, %s1784_s9 }
 0x266   : > { %p1310_p11 = scmp.ne.s32.totalorder %s1308_s1, %s1309_s18  ;;  %p1315_p3 = scmp.lt.s32.totalorder %s1313_s30, %s1309_s18 }
 0x268   : > { %p1311_p0 = pnand %p1310_p11, %p1590_p13  ;;  %p1316_p1 = por %p1315_p3, %p1314_p6 }
 0x26a   : > { %p1312_p2 = pneg %p1311_p0 }
 0x26c   : > { %p1317_p4 = pnand %p1316_p1, %p1312_p2 }
 0x26e   : > { %1320 = shalt.err (!%p1317_p4)
}
 0x26f   : > { %979 = dma.vmem_to_hbm [thread:$0]  (%p1590_p13), %s688_s22, 128, %s690_s4, %s1685_s29  }
 0x270   : > { %s699_s21 = scalar_lea.hbm %s1785_s10, %s1676_s17  ;;  %s1808_s12 = scalar_lea.vmem [#allocation20], %s1626_s25 }
 0x271   : > { %s701_s3 = sshll.u32 %s1808_s12, 4  ;;  %s703_s0 = sshll.u32 %s699_s21, 4  ;;  %s702_s3 = int_to_ptr.vmem [resolvable:$true] %s701_s3  ;;  %s704_s0 = int_to_ptr.hbm [resolvable:$true] %s703_s0 }
 0x272   : > { %s647_s1 = scalar_lea.sflag [#allocation21], %s1623_s23  ;;  %s1335_s18 = sshra.s32 %s704_s0, 4  ;;  %s1336_s18 = int_to_ptr.hbm [resolvable:$true] %s1335_s18 }
 0x273   : > { %s1337_s20 = scalar_lea.hbm %s1336_s18, 8  ;;  %s1341_s29 = scalar_lea.hbm %s1785_s10, 64 }
 0x274   : > { %p1338_p12 = scmp.ne.s32.totalorder %s1336_s18, %s1337_s20  ;;  %p1342_p9 = scmp.lt.s32.totalorder %s1336_s18, %s1785_s10 }
 0x275   : > { %p1343_p10 = scmp.lt.s32.totalorder %s1341_s29, %s1337_s20 }
 0x276   : > { %p1339_p8 = pnand %p1338_p12, %p1590_p13 }
 0x277   : > { %p1344_p11 = por %p1343_p10, %p1342_p9 }
 0x278   : > { %p1340_p7 = pneg %p1339_p8 }
 0x27a   : > { %p1345_p0 = pnand %p1344_p11, %p1340_p7 }
 0x27c   : > { %1348 = shalt.err (!%p1345_p0)
}
 0x27d   : > { %980 = dma.vmem_to_hbm [thread:$0]  (%p1590_p13), %s702_s3, 128, %s704_s0, %s647_s1   ;;  %v610_v53 = vpop.permute.xlu1 %609  ;;  %v608_v54 = vsub.f32 1.0, %v1666_v44 }
 0x27e   : > { %s1809_s2 = smov 32   ;;  %s657_s12 = scalar_lea.hbm %s1782_s7, %s1676_s17 }
 0x27f   : > { %v612_v56 = vmul.f32 %v610_v53, %v608_v54  ;;  %s1810_s3 = scalar_lea.vmem [#allocation16], %s1626_s25  ;;  %s661_s1 = sshll.u32 %s657_s12, 4  ;;  %s662_s1 = int_to_ptr.hbm [resolvable:$true] %s661_s1 }
 0x280   : > { %s659_s0 = sshll.u32 %s1810_s3, 4  ;;  %s1811_s18 = smov %s1810_s3  ;;  %s660_s0 = int_to_ptr.vmem [resolvable:$true] %s659_s0 }
 0x281   : > { %s632_s20 = scalar_lea.sflag [#allocation7], %s1623_s23  ;;  %s1363_s30 = sshra.s32 %s662_s1, 4  ;;  %s1364_s30 = int_to_ptr.hbm [resolvable:$true] %s1363_s30 }
 0x282   : > { %s1365_s11 = scalar_lea.hbm %s1364_s30, 8  ;;  %s1369_s22 = scalar_lea.hbm %s1782_s7, 64 }
 0x283   : > { %p1366_p2 = scmp.ne.s32.totalorder %s1364_s30, %s1365_s11  ;;  %p1370_p1 = scmp.lt.s32.totalorder %s1364_s30, %s1782_s7 }
 0x284   : > { %p1371_p4 = scmp.lt.s32.totalorder %s1369_s22, %s1365_s11 }
 0x285   : > { %p1367_p6 = pnand %p1366_p2, %p1590_p13 }
 0x286   : > { %p1372_p12 = por %p1371_p4, %p1370_p1 }
 0x287   : > { %p1368_p3 = pneg %p1367_p6 }
 0x289   : > { %p1373_p8 = pnand %p1372_p12, %p1368_p3 }
 0x2d1   : > { %v615_v55 = vpop.permute.xlu1 %614 }
 0x2d2   : > { %v617_v57 = vmul.f32 %v615_v55, %v1666_v44 }
 0x2d4   : > { %v618_v58 = vadd.f32 %v617_v57, %v612_v56 }
 0x2d6   : > { %1083 = vtanh.f32 %v618_v58 }
 0x2dc   : > { %v1084_v59 = vpop.eup %1083 }
 0x2dd   : > { %621 = vrot.lane.b32.xlu2 %v1084_v59, %s1809_s2 }
 0x337   : > { %v622_v60 = vpop.permute.xlu2 %621 }
 0x338   : > { %624 = vst.msk [vmem:[#allocation2] sm:$0xff] %vm578_vm4, %v622_v60 }
 0x339   : > { %627 = vst.msk [vmem:[%s1811_s18] sm:$0xff] %vm578_vm4, %v622_v60 }
 0x33a   : > { %1376 = shalt.err (!%p1373_p8)
}
 0x33b   : > { %977 = dma.vmem_to_hbm [thread:$0]  (%p1590_p13), %s660_s0, 128, %s662_s1, %s632_s20  }
 0x33c PF: > { %p1029_p7 = scmp.ge.s32.totalorder %s1435_s16, 2  ;;  %s715_s23 = sand.u32 1, %s1423_s13  }
 0x33d   : > { %s716_s25 = scalar_lea.sflag [#allocation7], %s715_s23 }
 0x33e   : > { %p1006_p9 = pnand %p1029_p7, %p1597_p5 }
 0x340   : > { %p1007_p10 = pneg %p1006_p9 }
 0x342   : > { %1410 = dma.done.wait (%p1007_p10), %s716_s25, 128  }
 0x343   : > { %1412 = vsyncadd (%p1007_p10), %s716_s25, 4294967168  ;;  %s1812_s27 = sadd.s32 4294967294, %s1435_s16  }
 0x344   : > { %s725_s21 = sand.u32 1, %s1812_s27  }
 0x345   : > { %s726_s12 = scalar_lea.sflag [#allocation18], %s725_s21 }
 0x346   : > { %1414 = dma.done.wait (%p1007_p10), %s726_s12, 256  }
 0x347   : > { %1416 = vsyncadd (%p1007_p10), %s726_s12, 4294967040  ;;  %s746_s19 = scalar_lea.sflag [#allocation21], %s715_s23 }
 0x348   : > { %1418 = dma.done.wait (%p1007_p10), %s746_s19, 128  }
 0x349   : > { %1420 = vsyncadd (%p1007_p10), %s746_s19, 4294967168  ;;  %p33_p13 = scmp.ge.s32.totalorder %s1570_s24, 10   ;;  %s1813_s13 = smov %s1427_s14 }
 0x34a   : > { %s1814_s14 = smov %s1431_s15  ;;  %s1815_s15 = smov %s1582_s28 }
 0x34b   : > { %s1816_s16 = smov %s1570_s24  ;;  %35 = sbr.rel (!%p33_p13) target bundleno = 18 (0x12), region = 166 }
 0x350   :  { %752 = vsyncpa [#allocation6], 1 }
 0x351   :  { %754 = vsyncpa [#allocation6 + $0x1], 1 }
 0x352   :  { %755 = vsyncpa [#allocation9], 1 }
 0x353   :  { %756 = vsyncpa [#allocation12], 1 }
 0x354   :  { %757 = vsyncpa [#allocation15], 1 }
 0x355   :  { %758 = vsyncpa [#allocation7], 1 }
 0x356   :  { %760 = vsyncpa [#allocation7 + $0x1], 1 }
 0x357   :  { %761 = vsyncpa [#allocation18], 1 }
 0x358   :  { %763 = vsyncpa [#allocation18 + $0x1], 1 }
 0x359   :  { %764 = vsyncpa [#allocation21], 1 }
 0x35a   :  { %766 = vsyncpa [#allocation21 + $0x1], 1 }

</bundles_post_ra>
